<compile_context>
chip_gen: v7x
topology: tpu7x:2x2x1
jax: 0.10.0
libtpu: 0.0.40
codegen_flags: <defaults>
</compile_context>

<pallas_src>
import functools

import jax
import jax.numpy as jnp
from jax import lax
from jax.experimental import pallas as pl
from jax.experimental.pallas import tpu as pltpu


# ----------------------------- kernels ------------------------------------ #

def _qkv_kernel(x_ref, w_ref, b_ref, q_ref, k_ref, v_ref, *, n_qk, n_v):
    # x_ref: (TM, K)  w_ref: (K, N)  b_ref: (1, N)
    # q_ref/k_ref: (TM, n_qk)  v_ref: (TM, n_v)   with N = 2*n_qk + n_v
    acc = jnp.dot(x_ref[...], w_ref[...], preferred_element_type=jnp.float32)
    acc = acc + b_ref[...].astype(jnp.float32)
    q_ref[...] = acc[:, :n_qk].astype(q_ref.dtype)
    k_ref[...] = acc[:, n_qk:2 * n_qk].astype(k_ref.dtype)
    v_ref[...] = acc[:, 2 * n_qk:2 * n_qk + n_v].astype(v_ref.dtype)


def _linear_residual_kernel(x_ref, w_ref, b_ref, r_ref, o_ref):
    # Output projection fused with bias + residual add (saves one HBM round trip).
    acc = jnp.dot(x_ref[...], w_ref[...], preferred_element_type=jnp.float32)
    acc = acc + b_ref[...].astype(jnp.float32) + r_ref[...].astype(jnp.float32)
    o_ref[...] = acc.astype(o_ref.dtype)


def _attention_kernel(q_ref, k_ref, v_ref, ctx_ref, attn_ref, *,
                      inv_temperature, n_heads, d_k, d_v):
    # q_ref/k_ref: (1, L, G*dk)   v_ref: (1, L, G*dv)
    # ctx_ref: (1, L, G*dv)       attn_ref: (G, 1, L, L)
    # Fold the temperature into q: an L x G*dk VPU pass instead of L x L per head.
    q_all = q_ref[0] * inv_temperature
    k_all = k_ref[0]
    v_all = v_ref[0]

    ctx_parts = []
    for h in range(n_heads):            # static unroll over the head group
        q = lax.slice_in_dim(q_all, h * d_k, (h + 1) * d_k, axis=1)
        k = lax.slice_in_dim(k_all, h * d_k, (h + 1) * d_k, axis=1)
        v = lax.slice_in_dim(v_all, h * d_v, (h + 1) * d_v, axis=1)

        # q @ k^T without materializing a transpose: contract last dims on the MXU.
        s = lax.dot_general(q, k, (((1,), (1,)), ((), ())),
                            preferred_element_type=jnp.float32)
        # Numerically-stable softmax over keys (matches torch.nn.Softmax(dim=2)).
        m = jnp.max(s, axis=-1, keepdims=True)
        p = jnp.exp(s - m)
        inv = 1.0 / jnp.sum(p, axis=-1, keepdims=True)   # single (L,1) divide

        # Normalize AFTER the PV matmul: no L x L divide on the VPU path.
        attn_ref[h, 0] = (p * inv).astype(attn_ref.dtype)
        o = jnp.dot(p.astype(v.dtype), v, preferred_element_type=jnp.float32) * inv
        ctx_parts.append(o)

    ctx = ctx_parts[0] if n_heads == 1 else jnp.concatenate(ctx_parts, axis=1)
    ctx_ref[0] = ctx.astype(ctx_ref.dtype)   # one lane-dense store per block


# ----------------------------- wrappers ------------------------------------ #

def _row_tile(m):
    """Largest 8-aligned row tile (<=512) that divides m, else the full dim."""
    for t in (512, 256, 128, 64, 32, 16, 8):
        if m % t == 0:
            return t
    return m


def _heads_per_block(n_head, d_k, d_v, seq_len):
    """Heads processed per attention grid step.

    All heads per block keeps every BlockSpec width equal to the full array dim
    (always layout-legal).  For big models pick the largest 128-lane-aligned
    divisor whose double-buffered block footprint stays within a few MiB.
    """
    budget = 8 << 20  # bytes per buffer set (blocks are double-buffered)

    def bytes_for(g):
        return 4 * (g * seq_len * seq_len + seq_len * g * (2 * d_k + 2 * d_v))

    if bytes_for(n_head) <= budget:
        return n_head
    best = n_head
    for g in range(1, n_head):
        if (n_head % g == 0 and (g * d_k) % 128 == 0 and (g * d_v) % 128 == 0
                and bytes_for(g) <= budget):
            best = g
    return best


def _qkv_projection(x2d, w_qkv, b_qkv, n_qk, n_v):
    M, K = x2d.shape
    N = w_qkv.shape[1]
    tm = _row_tile(M)
    itemsize = jnp.dtype(x2d.dtype).itemsize
    kernel = functools.partial(_qkv_kernel, n_qk=n_qk, n_v=n_v)
    return pl.pallas_call(
        kernel,
        out_shape=(
            jax.ShapeDtypeStruct((M, n_qk), x2d.dtype),
            jax.ShapeDtypeStruct((M, n_qk), x2d.dtype),
            jax.ShapeDtypeStruct((M, n_v), x2d.dtype),
        ),
        grid_spec=pltpu.PrefetchScalarGridSpec(
            num_scalar_prefetch=0,
            grid=(M // tm,),
            in_specs=[
                pl.BlockSpec((tm, K), lambda i: (i, 0)),
                pl.BlockSpec((K, N), lambda i: (0, 0)),
                pl.BlockSpec((1, N), lambda i: (0, 0)),
            ],
            out_specs=[
                pl.BlockSpec((tm, n_qk), lambda i: (i, 0)),
                pl.BlockSpec((tm, n_qk), lambda i: (i, 0)),
                pl.BlockSpec((tm, n_v), lambda i: (i, 0)),
            ],
        ),
        compiler_params=pltpu.CompilerParams(dimension_semantics=("parallel",)),
        cost_estimate=pl.CostEstimate(
            flops=2 * M * K * N,
            transcendentals=0,
            bytes_accessed=(M * K + K * N + M * N) * itemsize,
        ),
    )(x2d, w_qkv, b_qkv)


def _linear_residual(x2d, w, b2d, res2d):
    M, K = x2d.shape
    N = w.shape[1]
    tm = _row_tile(M)
    itemsize = jnp.dtype(x2d.dtype).itemsize
    return pl.pallas_call(
        _linear_residual_kernel,
        out_shape=jax.ShapeDtypeStruct((M, N), x2d.dtype),
        grid_spec=pltpu.PrefetchScalarGridSpec(
            num_scalar_prefetch=0,
            grid=(M // tm,),
            in_specs=[
                pl.BlockSpec((tm, K), lambda i: (i, 0)),
                pl.BlockSpec((K, N), lambda i: (0, 0)),
                pl.BlockSpec((1, N), lambda i: (0, 0)),
                pl.BlockSpec((tm, N), lambda i: (i, 0)),
            ],
            out_specs=pl.BlockSpec((tm, N), lambda i: (i, 0)),
        ),
        compiler_params=pltpu.CompilerParams(dimension_semantics=("parallel",)),
        cost_estimate=pl.CostEstimate(
            flops=2 * M * K * N + M * N,
            transcendentals=0,
            bytes_accessed=(M * K + K * N + 2 * M * N) * itemsize,
        ),
    )(x2d, w, b2d, res2d)


def _scaled_dot_product_attention(q3d, k3d, v3d, *, n_head, d_k, d_v, temperature):
    # q3d/k3d: (B, L, H*dk)   v3d: (B, L, H*dv)
    B, L, _ = q3d.shape
    G = _heads_per_block(n_head, d_k, d_v, L)
    kernel = functools.partial(_attention_kernel,
                               inv_temperature=1.0 / float(temperature),
                               n_heads=G, d_k=d_k, d_v=d_v)
    itemsize = jnp.dtype(q3d.dtype).itemsize
    return pl.pallas_call(
        kernel,
        out_shape=(
            jax.ShapeDtypeStruct((B, L, n_head * d_v), q3d.dtype),
            jax.ShapeDtypeStruct((n_head, B, L, L), q3d.dtype),
        ),
        grid_spec=pltpu.PrefetchScalarGridSpec(
            num_scalar_prefetch=0,
            grid=(B, n_head // G),
            in_specs=[
                pl.BlockSpec((1, L, G * d_k), lambda b, g: (b, 0, g)),
                pl.BlockSpec((1, L, G * d_k), lambda b, g: (b, 0, g)),
                pl.BlockSpec((1, L, G * d_v), lambda b, g: (b, 0, g)),
            ],
            out_specs=[
                pl.BlockSpec((1, L, G * d_v), lambda b, g: (b, 0, g)),
                pl.BlockSpec((G, 1, L, L), lambda b, g: (g, b, 0, 0)),
            ],
        ),
        compiler_params=pltpu.CompilerParams(
            dimension_semantics=("parallel", "parallel")),
        cost_estimate=pl.CostEstimate(
            flops=2 * n_head * B * L * L * (d_k + d_v),
            transcendentals=n_head * B * L * L,
            bytes_accessed=(2 * B * L * n_head * d_k
                            + 2 * B * L * n_head * d_v
                            + n_head * B * L * L) * itemsize,
        ),
    )(q3d, k3d, v3d)


def multi_head_attention(x, w_qs, b_qs, w_ks, b_ks, w_vs, b_vs, w_fc, b_fc,
                         *, n_head, d_k, d_v):
    """MultiHeadAttention.forward (mask=None, dropout=0). Weights in PyTorch
    nn.Linear layout: w_* is (out_features, in_features), b_* is (out_features,)."""
    B, L, d_model = x.shape
    temperature = float(d_model) ** 0.5   # matches np.power(d_model, 0.5)
    M = B * L
    n_qk = n_head * d_k
    n_v = n_head * d_v

    x2d = x.reshape(M, d_model)

    # Fused Q/K/V projection: one wide matmul, three column-split outputs.
    w_qkv = jnp.concatenate([w_qs.T, w_ks.T, w_vs.T], axis=1)   # (d_model, 2*n_qk+n_v)
    b_qkv = jnp.concatenate([b_qs, b_ks, b_vs]).reshape(1, -1)
    q2d, k2d, v2d = _qkv_projection(x2d, w_qkv, b_qkv, n_qk, n_v)

    # Contiguous reshapes only (no XLA transposes / extra HBM round trips).
    q3d = q2d.reshape(B, L, n_qk)
    k3d = k2d.reshape(B, L, n_qk)
    v3d = v2d.reshape(B, L, n_v)

    ctx3d, attn4d = _scaled_dot_product_attention(
        q3d, k3d, v3d, n_head=n_head, d_k=d_k, d_v=d_v, temperature=temperature)

    # ctx is already (B, L, H*dv) in PyTorch's merged-head order; free reshape.
    ctx2d = ctx3d.reshape(M, n_v)
    out2d = _linear_residual(ctx2d, w_fc.T, b_fc.reshape(1, -1), x2d)

    # attn is (H, B, L, L) head-major; free reshape to PyTorch's (H*B, L, L).
    return out2d.reshape(B, L, d_model), attn4d.reshape(n_head * B, L, L)


# ------------------------------- demo -------------------------------------- #

if __name__ == "__main__":
    B, L, d_model, n_head, d_k, d_v = 2, 16, 32, 2, 8, 8

    key = jax.random.PRNGKey(0)
    keys = jax.random.split(key, 9)
    x = jax.random.normal(keys[0], (B, L, d_model), dtype=jnp.float32)

    def linear_init(kw, kb, fan_in, fan_out):
        # PyTorch nn.Linear default init: U(-1/sqrt(fan_in), 1/sqrt(fan_in))
        bound = 1.0 / jnp.sqrt(jnp.float32(fan_in))
        w = jax.random.uniform(kw, (fan_out, fan_in), jnp.float32, -bound, bound)
        b = jax.random.uniform(kb, (fan_out,), jnp.float32, -bound, bound)
        return w, b

    w_qs, b_qs = linear_init(keys[1], keys[2], d_model, n_head * d_k)
    w_ks, b_ks = linear_init(keys[3], keys[4], d_model, n_head * d_k)
    w_vs, b_vs = linear_init(keys[5], keys[6], d_model, n_head * d_v)
    w_fc, b_fc = linear_init(keys[7], keys[8], n_head * d_v, d_model)

    out, attn = multi_head_attention(
        x, w_qs, b_qs, w_ks, b_ks, w_vs, b_vs, w_fc, b_fc,
        n_head=n_head, d_k=d_k, d_v=d_v)
    out = jax.block_until_ready(out)
    attn = jax.block_until_ready(attn)

    # Pure-JAX reference of the exact PyTorch forward (mask=None, dropout=0).
    def reference(x):
        q = x @ w_qs.T + b_qs
        k = x @ w_ks.T + b_ks
        v = x @ w_vs.T + b_vs
        q = q.reshape(B, L, n_head, d_k).transpose(2, 0, 1, 3).reshape(n_head * B, L, d_k)
        k = k.reshape(B, L, n_head, d_k).transpose(2, 0, 1, 3).reshape(n_head * B, L, d_k)
        v = v.reshape(B, L, n_head, d_v).transpose(2, 0, 1, 3).reshape(n_head * B, L, d_v)
        s = jnp.einsum("bqd,bkd->bqk", q, k) / (float(d_model) ** 0.5)
        a = jax.nn.softmax(s, axis=-1)
        o = jnp.einsum("bqk,bkd->bqd", a, v)
        o = o.reshape(n_head, B, L, d_v).transpose(1, 2, 0, 3).reshape(B, L, n_head * d_v)
        o = o @ w_fc.T + b_fc + x
        return o, a

    ref_out, ref_attn = reference(x)

    assert out.shape == (B, L, d_model)
    assert attn.shape == (n_head * B, L, L)
    assert jnp.allclose(out, ref_out, atol=1e-4, rtol=1e-4)
    assert jnp.allclose(attn, ref_attn, atol=1e-5, rtol=1e-5)
    print("KERNEL_OK")
</pallas_src>

<mosaic_0001>
module attributes {stable_mosaic.version = 11 : i64} {
  func.func @_qkv_kernel(%arg0: i32, %arg1: memref<32x32xf32, #tpu.memory_space<vmem>>, %arg2: memref<32x48xf32, #tpu.memory_space<vmem>>, %arg3: memref<1x48xf32, #tpu.memory_space<vmem>>, %arg4: memref<32x16xf32, #tpu.memory_space<vmem>>, %arg5: memref<32x16xf32, #tpu.memory_space<vmem>>, %arg6: memref<32x16xf32, #tpu.memory_space<vmem>>) attributes {dimension_semantics = [#tpu.dimension_semantics<parallel>], iteration_bounds = array<i64: 1>, scalar_prefetch = 0 : i64, scratch_operands = 0 : i64, tpu.core_type = #tpu.core_type<tc>, window_params = [{transform_indices = @transform_0, window_bounds = array<i64: 32, 32>}, {pipeline_mode = #tpu.pipeline_mode<synchronous>, transform_indices = @transform_1, window_bounds = array<i64: 32, 48>}, {pipeline_mode = #tpu.pipeline_mode<synchronous>, transform_indices = @transform_2, window_bounds = array<i64: 1, 48>}, {transform_indices = @transform_3, window_bounds = array<i64: 32, 16>}, {transform_indices = @transform_4, window_bounds = array<i64: 32, 16>}, {transform_indices = @transform_5, window_bounds = array<i64: 32, 16>}]} {
    %c0 = arith.constant 0 : index
    %c0_0 = arith.constant 0 : index
    %0 = vector.load %arg1[%c0, %c0_0] : memref<32x32xf32, #tpu.memory_space<vmem>>, vector<32x32xf32>
    %c0_1 = arith.constant 0 : index
    %c0_2 = arith.constant 0 : index
    %1 = vector.load %arg2[%c0_1, %c0_2] : memref<32x48xf32, #tpu.memory_space<vmem>>, vector<32x48xf32>
    %cst = arith.constant dense<0.000000e+00> : vector<32x48xf32>
    %2 = tpu.matmul %0, %1, %cst {dimension_numbers = #tpu.dot_dimension_numbers<[1], [0], [0], [1], [0, 0, 1, 1], [], []>} : vector<32x32xf32>, vector<32x48xf32>, vector<32x48xf32> -> vector<32x48xf32>
    %c0_3 = arith.constant 0 : index
    %c0_4 = arith.constant 0 : index
    %3 = vector.load %arg3[%c0_3, %c0_4] : memref<1x48xf32, #tpu.memory_space<vmem>>, vector<1x48xf32>
    %4 = vector.broadcast %3 : vector<1x48xf32> to vector<32x48xf32>
    %5 = arith.addf %2, %4 : vector<32x48xf32>
    %6 = vector.extract_strided_slice %5 {offsets = [0, 0], sizes = [32, 16], strides = [1, 1]} : vector<32x48xf32> to vector<32x16xf32>
    %c0_5 = arith.constant 0 : index
    %c0_6 = arith.constant 0 : index
    %7 = vector.load %arg4[%c0_5, %c0_6] : memref<32x16xf32, #tpu.memory_space<vmem>>, vector<32x16xf32>
    tpu.vector_store %arg4[%c0_5, %c0_6], %6 {strides = array<i32>} : memref<32x16xf32, #tpu.memory_space<vmem>>, vector<32x16xf32>,
    %8 = vector.extract_strided_slice %5 {offsets = [0, 16], sizes = [32, 16], strides = [1, 1]} : vector<32x48xf32> to vector<32x16xf32>
    %c0_7 = arith.constant 0 : index
    %c0_8 = arith.constant 0 : index
    %9 = vector.load %arg5[%c0_7, %c0_8] : memref<32x16xf32, #tpu.memory_space<vmem>>, vector<32x16xf32>
    tpu.vector_store %arg5[%c0_7, %c0_8], %8 {strides = array<i32>} : memref<32x16xf32, #tpu.memory_space<vmem>>, vector<32x16xf32>,
    %10 = vector.extract_strided_slice %5 {offsets = [0, 32], sizes = [32, 16], strides = [1, 1]} : vector<32x48xf32> to vector<32x16xf32>
    %c0_9 = arith.constant 0 : index
    %c0_10 = arith.constant 0 : index
    %11 = vector.load %arg6[%c0_9, %c0_10] : memref<32x16xf32, #tpu.memory_space<vmem>>, vector<32x16xf32>
    tpu.vector_store %arg6[%c0_9, %c0_10], %10 {strides = array<i32>} : memref<32x16xf32, #tpu.memory_space<vmem>>, vector<32x16xf32>,
    return
  }
  func.func @transform_0(%arg0: i32) -> (i32, i32) {
    %c0_i32 = arith.constant 0 : i32
    %c0_i32_0 = arith.constant 0 : i32
    return %arg0, %c0_i32 : i32, i32
  }
  func.func @transform_1(%arg0: i32) -> (i32, i32) {
    %c0_i32 = arith.constant 0 : i32
    %c0_i32_0 = arith.constant 0 : i32
    %c0_i32_1 = arith.constant 0 : i32
    return %c0_i32, %c0_i32_0 : i32, i32
  }
  func.func @transform_2(%arg0: i32) -> (i32, i32) {
    %c0_i32 = arith.constant 0 : i32
    %c0_i32_0 = arith.constant 0 : i32
    %c0_i32_1 = arith.constant 0 : i32
    return %c0_i32, %c0_i32_0 : i32, i32
  }
  func.func @transform_3(%arg0: i32) -> (i32, i32) {
    %c0_i32 = arith.constant 0 : i32
    %c0_i32_0 = arith.constant 0 : i32
    return %arg0, %c0_i32 : i32, i32
  }
  func.func @transform_4(%arg0: i32) -> (i32, i32) {
    %c0_i32 = arith.constant 0 : i32
    %c0_i32_0 = arith.constant 0 : i32
    return %arg0, %c0_i32 : i32, i32
  }
  func.func @transform_5(%arg0: i32) -> (i32, i32) {
    %c0_i32 = arith.constant 0 : i32
    %c0_i32_0 = arith.constant 0 : i32
    return %arg0, %c0_i32 : i32, i32
  }
}

</mosaic_0001>

<bundles_post_ra>
// kernel: tpu_custom_call.1
= control target key start
LH: loop header
LB: loop body
LE: loop exit
PB: predicated region body
PF: predicated region fallthrough
CT: control target
= control target key end

     0   :  { %11 = vsyncpa [#allocation3], 0  ;;  %s421_s0 = inlined_call_operand.hbm [shape: f32[32,32], index: 0, kind: input, shape index: {}]   ;;  %s422_s1 = inlined_call_operand.hbm [shape: f32[32,48], index: 1, kind: input, shape index: {}]   ;;  %s423_s2 = inlined_call_operand.vmem [shape: f32[1,48], index: 2, kind: input, shape index: {}]   ;;  %s424_s3 = inlined_call_operand.vmem [shape: f32[32,16], index: 3, kind: output, shape index: {0}]   ;;  %s425_s4 = inlined_call_operand.vmem [shape: f32[32,16], index: 4, kind: output, shape index: {1}]   ;;  %s426_s5 = inlined_call_operand.vmem [shape: f32[32,16], index: 5, kind: output, shape index: {2}]  }
   0x1   :  { %12 = vsyncpa [#allocation5], 0  ;;  %s306_s18 = smov [#allocation2]   ;;  %s258_s22 = scalar_lea.hbm %s421_s0, 512 }
   0x2   :  { %s18_s19 = sshll.u32 %s306_s18, 4  ;;  %p259_p0 = scmp.ne.s32.totalorder %s421_s0, %s258_s22  ;;  %s19_s19 = int_to_ptr.vmem [resolvable:$true] %s18_s19 }
   0x3   :  { %p262_p1 = scmp.lt.u32.totalorder %s258_s22, %s421_s0 }
   0x5   :  { %p264_p2 = pnand %p262_p1, %p259_p0 }
   0x7   :  { %267 = shalt.err (!%p264_p2)
}
   0x8   :  { %s268_s27 = scalar_lea.vmem %s19_s19, 512  ;;  %p273_p4 = scmp.lt.s32.totalorder %s19_s19, %s19_s19 }
   0x9   :  { %p269_p3 = scmp.ne.s32.totalorder %s19_s19, %s268_s27  ;;  %p274_p5 = scmp.lt.s32.totalorder %s268_s27, %s268_s27 }
   0xb   :  { %p275_p6 = por %p274_p5, %p273_p4 }
   0xd   :  { %p276_p7 = pnand %p275_p6, %p269_p3 }
   0xf   :  { %279 = shalt.err (!%p276_p7)
}
  0x10   :  { %s307_s28 = smov 128   ;;  %s308_s29 = smov 8  }
  0x11   :  { %24 = dma.hbm_to_vmem [thread:$0]  %s421_s0, 512, %s19_s19, [#allocation3], %s307_s28, %s307_s28, %s308_s29  }
  0x12   :  { %s309_s7 = smov [#allocation4]   ;;  %s280_s11 = scalar_lea.hbm %s422_s1, 512 }
  0x13   :  { %s30_s8 = sshll.u32 %s309_s7, 4  ;;  %p281_p8 = scmp.ne.s32.totalorder %s422_s1, %s280_s11  ;;  %s31_s8 = int_to_ptr.vmem [resolvable:$true] %s30_s8 }
  0x14   :  { %p284_p9 = scmp.lt.u32.totalorder %s280_s11, %s422_s1 }
  0x16   :  { %p286_p10 = pnand %p284_p9, %p281_p8 }
  0x18   :  { %289 = shalt.err (!%p286_p10)
}
  0x19   :  { %s290_s16 = scalar_lea.vmem %s31_s8, 512  ;;  %p295_p12 = scmp.lt.s32.totalorder %s31_s8, %s31_s8 }
  0x1a   :  { %p291_p11 = scmp.ne.s32.totalorder %s31_s8, %s290_s16  ;;  %p296_p13 = scmp.lt.s32.totalorder %s290_s16, %s290_s16 }
  0x1c   :  { %p297_p0 = por %p296_p13, %p295_p12 }
  0x1e   :  { %p298_p1 = pnand %p297_p0, %p291_p11 }
  0x20   :  { %301 = shalt.err (!%p298_p1)
}
  0x21   :  { %36 = dma.hbm_to_vmem [thread:$0]  %s422_s1, 512, %s31_s8, [#allocation5], %s307_s28, %s307_s28, %s308_s29  }
  0x22   :  { %302 = dma.done.wait [#allocation3], 512  }
  0x23   :  { %303 = vsyncadd [#allocation3], 4294966784 }
  0x24   :  { %304 = dma.done.wait [#allocation5], 512  }
  0x25   :  { %305 = vsyncadd [#allocation5], 4294966784  ;;  %vm60_vm0 = vcmask 261120   ;;  %v49_v0 = vld [vmem:[#allocation4] sm:$0xff]  ;;  %v50_v1 = vld [vmem:[#allocation4 + $0x8] sm:$0xff]  ;;  %vm158_vm1 = vcmask 130048  }
  0x26   :  { %v51_v2 = vld [vmem:[#allocation4 + $0x10] sm:$0xff]  ;;  %v240_v3 = vpack.c.bf16 %v50_v1, %v49_v0  ;;  %v52_v4 = vld [vmem:[#allocation4 + $0x18] sm:$0xff]  ;;  %v45_v5 = vld [vmem:[#allocation2] sm:$0xff]  ;;  %s311_s27 = smov 96  }
  0x27   :  { %v47_v6 = vld [vmem:[#allocation2 + $0x10] sm:$0xff]  ;;  %v244_v7 = vpack.c.bf16 %v52_v4, %v51_v2  ;;  %234 = vmatprep.mubr.msk.f32.mxu0 %vm60_vm0, %v45_v5  ;;  %v46_v8 = vld [vmem:[#allocation2 + $0x8] sm:$0xff]  ;;  %v48_v9 = vld [vmem:[#allocation2 + $0x18] sm:$0xff] }
  0x28   :  { %237 = vmatprep.mubr.msk.f32.mxu1 %vm60_vm0, %v47_v6  ;;  %241 = vmatprep.subr.bf16.mxu0 %v240_v3  ;;  %v213_v10 = vld [vmem:[%s423_s2] ss:$0 sm:$0xff]  ;;  %s310_s2 = smov 112  }
  0x29   :  { %248 = vmatprep.subr.bf16.mxu1 %v240_v3  ;;  %243 = vmatpush3.bf16.msra.mxu0 %v240_v3 }
  0x2a   :  { %250 = vmatpush3.bf16.msra.mxu1 %v240_v3  ;;  %245 = vmatprep.subr.bf16.mxu0 %v244_v7 }
  0x2b   :  { %249 = vmatprep.subr.bf16.mxu1 %v244_v7 }
  0x2d   :  { %247 = vmatpush3.bf16.msra.mxu0 %v244_v7 }
  0x2e   :  { %251 = vmatpush3.bf16.msra.mxu1 %v244_v7 }
  0x30   :  { %235 = vmatmul.mubr.msk.f32.vlgmr.msra.gmra.mrb[0].mxu0 %vm60_vm0, %v46_v8 }
  0x31   :  { %238 = vmatmul.mubr.msk.f32.vlgmr.msra.gmra.mrb[0].mxu1 %vm60_vm0, %v48_v9 }
 0x103   :  { %v236_v11 = vpop.f32.mrb[0].mxu0 }
 0x104   :  { %v239_v12 = vpop.f32.mrb[0].mxu1  ;;  %v145_v13 = vadd.f32 %v236_v11, %v213_v10  ;;  %v139_v15 = vpop.f32.mrb[1].mxu0 }
 0x105   :  { %v155_v14 = vadd.f32 %v239_v12, %v213_v10  ;;  %v149_v16 = vpop.f32.mrb[1].mxu1  ;;  %v140_v17 = vadd.f32 %v213_v10, %v139_v15 }
 0x106   :  { %v150_v18 = vadd.f32 %v213_v10, %v149_v16  ;;  %160 = vst.msk [vmem:[%s424_s3 + $0x8] sm:$0xff] %vm158_vm1, %v145_v13  ;;  %169 = vrot.lane.b32.xlu0 %v145_v13, %s310_s2 }
 0x107   :  { %162 = vst.msk [vmem:[%s424_s3 + $0x18] sm:$0xff] %vm158_vm1, %v155_v14  ;;  %173 = vrot.lane.b32.xlu1 %v155_v14, %s310_s2  ;;  %159 = vst.msk [vmem:[%s424_s3] sm:$0xff] %vm158_vm1, %v140_v17 }
 0x108   :  { %161 = vst.msk [vmem:[%s424_s3 + $0x10] sm:$0xff] %vm158_vm1, %v150_v18 }
 0x10a   :  { %167 = vrot.lane.b32.xlu0 %v140_v17, %s310_s2 }
 0x10b   :  { %185 = vrot.lane.b32.xlu1 %v145_v13, %s311_s27 }
 0x10e   :  { %183 = vrot.lane.b32.xlu0 %v140_v17, %s311_s27 }
 0x10f   :  { %171 = vrot.lane.b32.xlu1 %v150_v18, %s310_s2 }
 0x112   :  { %187 = vrot.lane.b32.xlu0 %v150_v18, %s311_s27 }
 0x113   :  { %189 = vrot.lane.b32.xlu1 %v155_v14, %s311_s27 }
 0x178   :  { %v170_v20 = vpop.permute.xlu0 %169 }
 0x179   :  { %v174_v19 = vpop.permute.xlu1 %173  ;;  %180 = vst.msk [vmem:[%s425_s4 + $0x8] sm:$0xff] %vm158_vm1, %v170_v20 }
 0x17a   :  { %182 = vst.msk [vmem:[%s425_s4 + $0x18] sm:$0xff] %vm158_vm1, %v174_v19 }
 0x17c   :  { %v168_v22 = vpop.permute.xlu0 %167 }
 0x17d   :  { %v186_v21 = vpop.permute.xlu1 %185  ;;  %179 = vst.msk [vmem:[%s425_s4] sm:$0xff] %vm158_vm1, %v168_v22 }
 0x17e   :  { %196 = vst.msk [vmem:[%s426_s5 + $0x8] sm:$0xff] %vm158_vm1, %v186_v21 }
 0x180   :  { %v184_v24 = vpop.permute.xlu0 %183 }
 0x181   :  { %v172_v23 = vpop.permute.xlu1 %171  ;;  %195 = vst.msk [vmem:[%s426_s5] sm:$0xff] %vm158_vm1, %v184_v24 }
 0x182   :  { %181 = vst.msk [vmem:[%s425_s4 + $0x10] sm:$0xff] %vm158_vm1, %v172_v23 }
 0x184   :  { %v188_v26 = vpop.permute.xlu0 %187 }
 0x185   :  { %v190_v25 = vpop.permute.xlu1 %189  ;;  %197 = vst.msk [vmem:[%s426_s5 + $0x10] sm:$0xff] %vm158_vm1, %v188_v26 }
 0x186   :  { %198 = vst.msk [vmem:[%s426_s5 + $0x18] sm:$0xff] %vm158_vm1, %v190_v25 }
 0x187   :  { %211 = vsyncpa [#allocation3], 1 }
 0x188   :  { %212 = vsyncpa [#allocation5], 1 }

</bundles_post_ra>
